<compile_context>
chip_gen: v5e
topology: v5e:2x2
jax: 0.10.0
libtpu: 0.0.40
codegen_flags: <defaults>
</compile_context>

<pallas_src>
import jax
import jax.numpy as jnp
from jax.experimental import pallas as pl
from jax.experimental.pallas import tpu as pltpu


def _round_up(x, m):
    return (x + m - 1) // m * m


def lift_kernel(x1_ref, x2_ref, wf_ref, bf_ref, wg_ref, bg_ref, y1_ref, y2_ref):
    """Whole coupling step for one row-tile.

    f(x1) and g(y2) are Linear layers -> two MXU matmuls (native-dtype operands,
    f32 accumulation); the lifting subtraction / addition is fused in between
    (VPU elementwise).
    """
    x1 = x1_ref[...]
    x2 = x2_ref[...]

    # f(x1) = x1 @ Wf + bf   (MXU, f32 accumulate)
    fx1 = jnp.dot(x1, wf_ref[...], preferred_element_type=jnp.float32)
    fx1 = fx1 + bf_ref[...].astype(jnp.float32)
    y2_f32 = x2.astype(jnp.float32) - fx1

    # Round y2 to storage dtype first, then feed it to g -> stored y2 and the
    # y2 used for y1 are identical (exact reconstruction in `rearward`).
    y2 = y2_f32.astype(y2_ref.dtype)

    # g(y2) = y2 @ Wg + bg
    gy2 = jnp.dot(y2, wg_ref[...], preferred_element_type=jnp.float32)
    gy2 = gy2 + bg_ref[...].astype(jnp.float32)
    y1 = x1.astype(jnp.float32) + gy2

    y2_ref[...] = y2
    y1_ref[...] = y1.astype(y1_ref.dtype)


def _vmem_capacity_bytes():
    try:
        return int(pltpu.get_tpu_info().vmem_capacity_bytes)
    except Exception:
        return 64 * 1024 * 1024  # conservative floor (v7x per-TC VMEM)


def lift_forward(x1, x2, wf, bf, wg, bg, *, row_tile=512, weight_dtype=None):
    """x1, x2: (B, S, H).  wf, wg: (H_out, H_in) PyTorch-style.  bf, bg: (H,)."""
    B, S, H = x1.shape
    N = B * S
    dtype = x1.dtype
    itemsize = jnp.dtype(dtype).itemsize

    w_dtype = jnp.dtype(weight_dtype) if weight_dtype is not None else jnp.dtype(wf.dtype)
    w_itemsize = w_dtype.itemsize
    b_itemsize = jnp.dtype(bf.dtype).itemsize

    # ---- wrapper-side layout glue (no pads, no slices) ----------------------
    # PyTorch Linear is y = x @ W.T + b -> pre-transpose once (tiny, one-shot).
    wf_t = wf.T.astype(w_dtype)
    wg_t = wg.T.astype(w_dtype)
    bf2 = bf.reshape(1, H)
    bg2 = bg.reshape(1, H)

    # Free reshapes (row-major contiguous): no extra HBM traffic.
    x1f = x1.reshape(N, H)
    x2f = x2.reshape(N, H)

    # Row tile: multiple of the sublane packing of the activation dtype
    # (8 f32 / 16 bf16 / 32 int8-fp8), clamped for tiny inputs.
    sub = max(8, 32 // max(itemsize, 1))
    rt = min(_round_up(row_tile, sub), _round_up(N, sub))

    # ---- VMEM budget (per generation, with headroom) -------------------------
    capacity = _vmem_capacity_bytes()
    budget = int(0.80 * capacity)          # ~51 MiB on v7x, ~102 MiB on v5e/v6e

    h_lane = _round_up(H, 128)             # internal lane padding of a VMEM tile
    h_sub = _round_up(H, sub)
    weight_bytes = 2 * h_sub * h_lane * w_itemsize        # single-buffered Wf, Wg
    bias_bytes = 2 * 8 * h_lane * b_itemsize

    def act_bytes(r):
        return 4 * 2 * r * h_lane * itemsize               # x1,x2,y1,y2 double-buffered

    while rt > sub and weight_bytes + bias_bytes + act_bytes(rt) > int(0.75 * budget):
        rt = max(sub, rt // 2)
    # TODO(synk): if weight_bytes alone exceeds the budget (very large H), a
    # K-split grid axis with a VMEM f32 accumulator is required; not needed at
    # demo scale so the full weights stay resident here.

    grid = (pl.cdiv(N, rt),)               # ragged last tile handled by OOB masking

    row_spec = pl.BlockSpec((rt, H), lambda i: (i, 0))

    cost = pl.CostEstimate(
        flops=2 * 2 * N * H * H + 2 * N * H,
        transcendentals=0,
        bytes_accessed=4 * N * H * itemsize + 2 * H * H * w_itemsize + 2 * H * b_itemsize,
    )

    def _run(single_buffer):
        def _const_spec(shape):
            idx = lambda i: (0,) * len(shape)
            if single_buffer:
                # Constant index map -> DMA'd once; no point double-buffering.
                return pl.BlockSpec(shape, idx, pipeline_mode=pl.Buffered(1))
            return pl.BlockSpec(shape, idx)

        w_spec = _const_spec((H, H))
        b_spec = _const_spec((1, H))

        return pl.pallas_call(
            lift_kernel,
            out_shape=(
                jax.ShapeDtypeStruct((N, H), dtype),
                jax.ShapeDtypeStruct((N, H), dtype),
            ),
            grid_spec=pltpu.PrefetchScalarGridSpec(
                num_scalar_prefetch=0,
                grid=grid,
                in_specs=[row_spec, row_spec, w_spec, b_spec, w_spec, b_spec],
                out_specs=[row_spec, row_spec],
            ),
            compiler_params=pltpu.CompilerParams(
                dimension_semantics=("parallel",),   # row axis sharded across TCs
                vmem_limit_bytes=budget,
            ),
            cost_estimate=cost,
        )(x1f, x2f, wf_t, bf2, wg_t, bg2)

    try:
        y1f, y2f = _run(single_buffer=True)
    except Exception:
        # Fallback for lowerings without per-operand pipeline_mode support.
        y1f, y2f = _run(single_buffer=False)

    return y1f.reshape(B, S, H), y2f.reshape(B, S, H)


def lift_reference(x1, x2, wf, bf, wg, bg):
    """Pure-JAX reference matching PyTorch Lift.forward with Linear f, g."""
    fx1 = jnp.einsum("bsh,oh->bso", x1, wf) + bf
    y2 = x2 - fx1
    gy2 = jnp.einsum("bsh,oh->bso", y2, wg) + bg
    y1 = x1 + gy2
    return y1, y2


if __name__ == "__main__":
    B, S, H = 2, 8, 32  # batch=2, seq=8, hidden=32

    key = jax.random.PRNGKey(0)
    k1, k2, k3, k4, k5, k6 = jax.random.split(key, 6)

    x1 = jax.random.normal(k1, (B, S, H), dtype=jnp.float32)
    x2 = jax.random.normal(k2, (B, S, H), dtype=jnp.float32)

    # Deterministic synthetic params (PyTorch Linear-style bound 1/sqrt(fan_in)).
    bound = 1.0 / (H ** 0.5)
    wf = jax.random.uniform(k3, (H, H), jnp.float32, -bound, bound)  # (out, in)
    bf = jax.random.uniform(k4, (H,), jnp.float32, -bound, bound)
    wg = jax.random.uniform(k5, (H, H), jnp.float32, -bound, bound)
    bg = jax.random.uniform(k6, (H,), jnp.float32, -bound, bound)

    y1, y2 = lift_forward(x1, x2, wf, bf, wg, bg)
    jax.block_until_ready((y1, y2))

    y1_ref, y2_ref = lift_reference(x1, x2, wf, bf, wg, bg)
    assert jnp.allclose(y1, y1_ref, atol=1e-5, rtol=1e-5)
    assert jnp.allclose(y2, y2_ref, atol=1e-5, rtol=1e-5)

    print("KERNEL_OK")
</pallas_src>

<mosaic_0001>
module attributes {stable_mosaic.version = 11 : i64} {
  func.func @lift_kernel(%arg0: i32, %arg1: memref<16x32xf32, #tpu.memory_space<vmem>>, %arg2: memref<16x32xf32, #tpu.memory_space<vmem>>, %arg3: memref<32x32xf32, #tpu.memory_space<vmem>>, %arg4: memref<1x32xf32, #tpu.memory_space<vmem>>, %arg5: memref<32x32xf32, #tpu.memory_space<vmem>>, %arg6: memref<1x32xf32, #tpu.memory_space<vmem>>, %arg7: memref<16x32xf32, #tpu.memory_space<vmem>>, %arg8: memref<16x32xf32, #tpu.memory_space<vmem>>) attributes {dimension_semantics = [#tpu.dimension_semantics<parallel>], iteration_bounds = array<i64: 1>, scalar_prefetch = 0 : i64, scratch_operands = 0 : i64, tpu.core_type = #tpu.core_type<tc>, window_params = [{transform_indices = @transform_0, window_bounds = array<i64: 16, 32>}, {transform_indices = @transform_1, window_bounds = array<i64: 16, 32>}, {pipeline_mode = #tpu.pipeline_mode<synchronous>, transform_indices = @transform_2, window_bounds = array<i64: 32, 32>}, {pipeline_mode = #tpu.pipeline_mode<synchronous>, transform_indices = @transform_3, window_bounds = array<i64: 1, 32>}, {pipeline_mode = #tpu.pipeline_mode<synchronous>, transform_indices = @transform_4, window_bounds = array<i64: 32, 32>}, {pipeline_mode = #tpu.pipeline_mode<synchronous>, transform_indices = @transform_5, window_bounds = array<i64: 1, 32>}, {transform_indices = @transform_6, window_bounds = array<i64: 16, 32>}, {transform_indices = @transform_7, window_bounds = array<i64: 16, 32>}]} {
    %c0 = arith.constant 0 : index
    %c0_0 = arith.constant 0 : index
    %0 = vector.load %arg1[%c0, %c0_0] : memref<16x32xf32, #tpu.memory_space<vmem>>, vector<16x32xf32>
    %c0_1 = arith.constant 0 : index
    %c0_2 = arith.constant 0 : index
    %1 = vector.load %arg2[%c0_1, %c0_2] : memref<16x32xf32, #tpu.memory_space<vmem>>, vector<16x32xf32>
    %c0_3 = arith.constant 0 : index
    %c0_4 = arith.constant 0 : index
    %2 = vector.load %arg3[%c0_3, %c0_4] : memref<32x32xf32, #tpu.memory_space<vmem>>, vector<32x32xf32>
    %cst = arith.constant dense<0.000000e+00> : vector<16x32xf32>
    %3 = tpu.matmul %0, %2, %cst {dimension_numbers = #tpu.dot_dimension_numbers<[1], [0], [0], [1], [0, 0, 1, 1], [], []>} : vector<16x32xf32>, vector<32x32xf32>, vector<16x32xf32> -> vector<16x32xf32>
    %c0_5 = arith.constant 0 : index
    %c0_6 = arith.constant 0 : index
    %4 = vector.load %arg4[%c0_5, %c0_6] : memref<1x32xf32, #tpu.memory_space<vmem>>, vector<1x32xf32>
    %5 = vector.broadcast %4 : vector<1x32xf32> to vector<16x32xf32>
    %6 = arith.addf %3, %5 : vector<16x32xf32>
    %7 = arith.subf %1, %6 : vector<16x32xf32>
    %c0_7 = arith.constant 0 : index
    %c0_8 = arith.constant 0 : index
    %8 = vector.load %arg5[%c0_7, %c0_8] : memref<32x32xf32, #tpu.memory_space<vmem>>, vector<32x32xf32>
    %cst_9 = arith.constant dense<0.000000e+00> : vector<16x32xf32>
    %9 = tpu.matmul %7, %8, %cst_9 {dimension_numbers = #tpu.dot_dimension_numbers<[1], [0], [0], [1], [0, 0, 1, 1], [], []>} : vector<16x32xf32>, vector<32x32xf32>, vector<16x32xf32> -> vector<16x32xf32>
    %c0_10 = arith.constant 0 : index
    %c0_11 = arith.constant 0 : index
    %10 = vector.load %arg6[%c0_10, %c0_11] : memref<1x32xf32, #tpu.memory_space<vmem>>, vector<1x32xf32>
    %11 = vector.broadcast %10 : vector<1x32xf32> to vector<16x32xf32>
    %12 = arith.addf %9, %11 : vector<16x32xf32>
    %13 = arith.addf %0, %12 : vector<16x32xf32>
    %c0_12 = arith.constant 0 : index
    %c0_13 = arith.constant 0 : index
    %14 = vector.load %arg8[%c0_12, %c0_13] : memref<16x32xf32, #tpu.memory_space<vmem>>, vector<16x32xf32>
    tpu.vector_store %arg8[%c0_12, %c0_13], %7 {strides = array<i32>} : memref<16x32xf32, #tpu.memory_space<vmem>>, vector<16x32xf32>,
    %c0_14 = arith.constant 0 : index
    %c0_15 = arith.constant 0 : index
    %15 = vector.load %arg7[%c0_14, %c0_15] : memref<16x32xf32, #tpu.memory_space<vmem>>, vector<16x32xf32>
    tpu.vector_store %arg7[%c0_14, %c0_15], %13 {strides = array<i32>} : memref<16x32xf32, #tpu.memory_space<vmem>>, vector<16x32xf32>,
    return
  }
  func.func @transform_0(%arg0: i32) -> (i32, i32) {
    %c0_i32 = arith.constant 0 : i32
    %c0_i32_0 = arith.constant 0 : i32
    return %arg0, %c0_i32 : i32, i32
  }
  func.func @transform_1(%arg0: i32) -> (i32, i32) {
    %c0_i32 = arith.constant 0 : i32
    %c0_i32_0 = arith.constant 0 : i32
    return %arg0, %c0_i32 : i32, i32
  }
  func.func @transform_2(%arg0: i32) -> (i32, i32) {
    %c0_i32 = arith.constant 0 : i32
    %c0_i32_0 = arith.constant 0 : i32
    %c0_i32_1 = arith.constant 0 : i32
    return %c0_i32, %c0_i32_0 : i32, i32
  }
  func.func @transform_3(%arg0: i32) -> (i32, i32) {
    %c0_i32 = arith.constant 0 : i32
    %c0_i32_0 = arith.constant 0 : i32
    %c0_i32_1 = arith.constant 0 : i32
    return %c0_i32, %c0_i32_0 : i32, i32
  }
  func.func @transform_4(%arg0: i32) -> (i32, i32) {
    %c0_i32 = arith.constant 0 : i32
    %c0_i32_0 = arith.constant 0 : i32
    %c0_i32_1 = arith.constant 0 : i32
    return %c0_i32, %c0_i32_0 : i32, i32
  }
  func.func @transform_5(%arg0: i32) -> (i32, i32) {
    %c0_i32 = arith.constant 0 : i32
    %c0_i32_0 = arith.constant 0 : i32
    %c0_i32_1 = arith.constant 0 : i32
    return %c0_i32, %c0_i32_0 : i32, i32
  }
  func.func @transform_6(%arg0: i32) -> (i32, i32) {
    %c0_i32 = arith.constant 0 : i32
    %c0_i32_0 = arith.constant 0 : i32
    return %arg0, %c0_i32 : i32, i32
  }
  func.func @transform_7(%arg0: i32) -> (i32, i32) {
    %c0_i32 = arith.constant 0 : i32
    %c0_i32_0 = arith.constant 0 : i32
    return %arg0, %c0_i32 : i32, i32
  }
}

module attributes {stable_mosaic.version = 11 : i64} {
  func.func @lift_kernel(%arg0: i32, %arg1: memref<16x32xf32, #tpu.memory_space<vmem>>, %arg2: memref<16x32xf32, #tpu.memory_space<vmem>>, %arg3: memref<32x32xf32, #tpu.memory_space<vmem>>, %arg4: memref<1x32xf32, #tpu.memory_space<vmem>>, %arg5: memref<32x32xf32, #tpu.memory_space<vmem>>, %arg6: memref<1x32xf32, #tpu.memory_space<vmem>>, %arg7: memref<16x32xf32, #tpu.memory_space<vmem>>, %arg8: memref<16x32xf32, #tpu.memory_space<vmem>>) attributes {dimension_semantics = [#tpu.dimension_semantics<parallel>], iteration_bounds = array<i64: 1>, scalar_prefetch = 0 : i64, scratch_operands = 0 : i64, tpu.core_type = #tpu.core_type<tc>, window_params = [{transform_indices = @transform_0, window_bounds = array<i64: 16, 32>}, {transform_indices = @transform_1, window_bounds = array<i64: 16, 32>}, {pipeline_mode = #tpu.pipeline_mode<synchronous>, transform_indices = @transform_2, window_bounds = array<i64: 32, 32>}, {pipeline_mode = #tpu.pipeline_mode<synchronous>, transform_indices = @transform_3, window_bounds = array<i64: 1, 32>}, {pipeline_mode = #tpu.pipeline_mode<synchronous>, transform_indices = @transform_4, window_bounds = array<i64: 32, 32>}, {pipeline_mode = #tpu.pipeline_mode<synchronous>, transform_indices = @transform_5, window_bounds = array<i64: 1, 32>}, {transform_indices = @transform_6, window_bounds = array<i64: 16, 32>}, {transform_indices = @transform_7, window_bounds = array<i64: 16, 32>}]} {
    %c0 = arith.constant 0 : index
    %c0_0 = arith.constant 0 : index
    %0 = vector.load %arg1[%c0, %c0_0] : memref<16x32xf32, #tpu.memory_space<vmem>>, vector<16x32xf32>
    %c0_1 = arith.constant 0 : index
    %c0_2 = arith.constant 0 : index
    %1 = vector.load %arg2[%c0_1, %c0_2] : memref<16x32xf32, #tpu.memory_space<vmem>>, vector<16x32xf32>
    %c0_3 = arith.constant 0 : index
    %c0_4 = arith.constant 0 : index
    %2 = vector.load %arg3[%c0_3, %c0_4] : memref<32x32xf32, #tpu.memory_space<vmem>>, vector<32x32xf32>
    %cst = arith.constant dense<0.000000e+00> : vector<16x32xf32>
    %3 = tpu.matmul %0, %2, %cst {dimension_numbers = #tpu.dot_dimension_numbers<[1], [0], [0], [1], [0, 0, 1, 1], [], []>} : vector<16x32xf32>, vector<32x32xf32>, vector<16x32xf32> -> vector<16x32xf32>
    %c0_5 = arith.constant 0 : index
    %c0_6 = arith.constant 0 : index
    %4 = vector.load %arg4[%c0_5, %c0_6] : memref<1x32xf32, #tpu.memory_space<vmem>>, vector<1x32xf32>
    %5 = vector.broadcast %4 : vector<1x32xf32> to vector<16x32xf32>
    %6 = arith.addf %3, %5 : vector<16x32xf32>
    %7 = arith.subf %1, %6 : vector<16x32xf32>
    %c0_7 = arith.constant 0 : index
    %c0_8 = arith.constant 0 : index
    %8 = vector.load %arg5[%c0_7, %c0_8] : memref<32x32xf32, #tpu.memory_space<vmem>>, vector<32x32xf32>
    %cst_9 = arith.constant dense<0.000000e+00> : vector<16x32xf32>
    %9 = tpu.matmul %7, %8, %cst_9 {dimension_numbers = #tpu.dot_dimension_numbers<[1], [0], [0], [1], [0, 0, 1, 1], [], []>} : vector<16x32xf32>, vector<32x32xf32>, vector<16x32xf32> -> vector<16x32xf32>
    %c0_10 = arith.constant 0 : index
    %c0_11 = arith.constant 0 : index
    %10 = vector.load %arg6[%c0_10, %c0_11] : memref<1x32xf32, #tpu.memory_space<vmem>>, vector<1x32xf32>
    %11 = vector.broadcast %10 : vector<1x32xf32> to vector<16x32xf32>
    %12 = arith.addf %9, %11 : vector<16x32xf32>
    %13 = arith.addf %0, %12 : vector<16x32xf32>
    %c0_12 = arith.constant 0 : index
    %c0_13 = arith.constant 0 : index
    %14 = vector.load %arg8[%c0_12, %c0_13] : memref<16x32xf32, #tpu.memory_space<vmem>>, vector<16x32xf32>
    tpu.vector_store %arg8[%c0_12, %c0_13], %7 {strides = array<i32>} : memref<16x32xf32, #tpu.memory_space<vmem>>, vector<16x32xf32>,
    %c0_14 = arith.constant 0 : index
    %c0_15 = arith.constant 0 : index
    %15 = vector.load %arg7[%c0_14, %c0_15] : memref<16x32xf32, #tpu.memory_space<vmem>>, vector<16x32xf32>
    tpu.vector_store %arg7[%c0_14, %c0_15], %13 {strides = array<i32>} : memref<16x32xf32, #tpu.memory_space<vmem>>, vector<16x32xf32>,
    return
  }
  func.func @transform_0(%arg0: i32) -> (i32, i32) {
    %c0_i32 = arith.constant 0 : i32
    %c0_i32_0 = arith.constant 0 : i32
    return %arg0, %c0_i32 : i32, i32
  }
  func.func @transform_1(%arg0: i32) -> (i32, i32) {
    %c0_i32 = arith.constant 0 : i32
    %c0_i32_0 = arith.constant 0 : i32
    return %arg0, %c0_i32 : i32, i32
  }
  func.func @transform_2(%arg0: i32) -> (i32, i32) {
    %c0_i32 = arith.constant 0 : i32
    %c0_i32_0 = arith.constant 0 : i32
    %c0_i32_1 = arith.constant 0 : i32
    return %c0_i32, %c0_i32_0 : i32, i32
  }
  func.func @transform_3(%arg0: i32) -> (i32, i32) {
    %c0_i32 = arith.constant 0 : i32
    %c0_i32_0 = arith.constant 0 : i32
    %c0_i32_1 = arith.constant 0 : i32
    return %c0_i32, %c0_i32_0 : i32, i32
  }
  func.func @transform_4(%arg0: i32) -> (i32, i32) {
    %c0_i32 = arith.constant 0 : i32
    %c0_i32_0 = arith.constant 0 : i32
    %c0_i32_1 = arith.constant 0 : i32
    return %c0_i32, %c0_i32_0 : i32, i32
  }
  func.func @transform_5(%arg0: i32) -> (i32, i32) {
    %c0_i32 = arith.constant 0 : i32
    %c0_i32_0 = arith.constant 0 : i32
    %c0_i32_1 = arith.constant 0 : i32
    return %c0_i32, %c0_i32_0 : i32, i32
  }
  func.func @transform_6(%arg0: i32) -> (i32, i32) {
    %c0_i32 = arith.constant 0 : i32
    %c0_i32_0 = arith.constant 0 : i32
    return %arg0, %c0_i32 : i32, i32
  }
  func.func @transform_7(%arg0: i32) -> (i32, i32) {
    %c0_i32 = arith.constant 0 : i32
    %c0_i32_0 = arith.constant 0 : i32
    return %arg0, %c0_i32 : i32, i32
  }
}

</mosaic_0001>

<bundles_post_ra>
// kernel: tpu_custom_call.1
= control target key start
LH: loop header
LB: loop body
LE: loop exit
PB: predicated region body
PF: predicated region fallthrough
CT: control target
= control target key end

     0   :  { %13 = vsyncpa [#allocation3], 0  ;;  %s490_s0 = inlined_call_operand.hbm [shape: f32[16,32], index: 0, kind: input, shape index: {}]   ;;  %s491_s1 = inlined_call_operand.hbm [shape: f32[16,32], index: 1, kind: input, shape index: {}]   ;;  %s492_s2 = inlined_call_operand.hbm [shape: f32[32,32], index: 2, kind: input, shape index: {}]   ;;  %s493_s3 = inlined_call_operand.vmem [shape: f32[1,32], index: 3, kind: input, shape index: {}]   ;;  %s494_s4 = inlined_call_operand.hbm [shape: f32[32,32], index: 4, kind: input, shape index: {}]   ;;  %s495_s5 = inlined_call_operand.vmem [shape: f32[1,32], index: 5, kind: input, shape index: {}]   ;;  %s496_s6 = inlined_call_operand.hbm [shape: f32[16,32], index: 6, kind: output, shape index: {0}]   ;;  %s497_s7 = inlined_call_operand.hbm [shape: f32[16,32], index: 7, kind: output, shape index: {1}]  }
   0x1   :  { %14 = vsyncpa [#allocation6], 0 }
   0x2   :  { %15 = vsyncpa [#allocation9], 0 }
   0x3   :  { %16 = vsyncpa [#allocation4], 0 }
   0x4   :  { %17 = vsyncpa [#allocation12], 0  ;;  %s35_s26 = sshll.u32 %s491_s1, 4  ;;  %s392_s27 = smov [#allocation5]   ;;  %s36_s26 = int_to_ptr.hbm [resolvable:$true] %s35_s26 }
   0x5   :  { %s37_s28 = sshll.u32 %s392_s27, 4  ;;  %s22_s8 = sshll.u32 %s490_s0, 4  ;;  %s38_s28 = int_to_ptr.vmem [resolvable:$true] %s37_s28  ;;  %s23_s8 = int_to_ptr.hbm [resolvable:$true] %s22_s8 }
   0x6   :  { %s393_s9 = smov 128   ;;  %s394_s10 = smov 8  }
   0x7   :  { %43 = dma.hbm_to_vmem [thread:$0]  %s36_s26, 256, %s38_s28, [#allocation6], %s393_s9, %s393_s9, %s394_s10  }
   0x8   :  { %s395_s11 = smov [#allocation2]   ;;  %s48_s1 = sshll.u32 %s492_s2, 4  ;;  %s49_s1 = int_to_ptr.hbm [resolvable:$true] %s48_s1 }
   0x9   :  { %s24_s12 = sshll.u32 %s395_s11, 4  ;;  %s63_s16 = sshll.u32 %s494_s4, 4  ;;  %s25_s12 = int_to_ptr.vmem [resolvable:$true] %s24_s12  ;;  %s64_s16 = int_to_ptr.hbm [resolvable:$true] %s63_s16 }
   0xa   :  { %30 = dma.hbm_to_vmem [thread:$0]  %s23_s8, 256, %s25_s12, [#allocation3], %s393_s9, %s393_s9, %s394_s10  }
   0xb   :  { %s396_s17 = smov [#allocation7]   ;;  %s397_s19 = smov [#allocation8]  }
   0xc   :  { %s50_s18 = sshll.u32 %s396_s17, 4  ;;  %s65_s2 = sshll.u32 %s397_s19, 4  ;;  %s51_s18 = int_to_ptr.vmem [resolvable:$true] %s50_s18  ;;  %s66_s2 = int_to_ptr.vmem [resolvable:$true] %s65_s2 }
   0xd   :  { %56 = dma.hbm_to_vmem [thread:$0]  %s49_s1, 512, %s51_s18, [#allocation6], %s393_s9, %s393_s9, %s394_s10  }
   0xe   :  { %71 = dma.hbm_to_vmem [thread:$0]  %s64_s16, 512, %s66_s2, [#allocation9], %s393_s9, %s393_s9, %s394_s10  }
   0xf   :  { %382 = dma.done.wait [#allocation3], 256  }
  0x10   :  { %383 = vsyncadd [#allocation3], 4294967040 }
  0x11   :  { %384 = dma.done.wait [#allocation6], 768  }
  0x12   :  { %385 = vsyncadd [#allocation6], 4294966528 }
  0x13   :  { %386 = dma.done.wait [#allocation9], 512  }
  0x14   :  { %387 = vsyncadd [#allocation9], 4294966784  ;;  %v97_v0 = vld [vmem:[#allocation7 + $0x18] sm:$0xff]  ;;  %v96_v1 = vld [vmem:[#allocation7 + $0x10] sm:$0xff]  ;;  %vm102_vm0 = vcmask 261120   ;;  %s398_s21 = smov [#allocation11]  }
  0x15   :  { %220 = vmatpush.msra.mxu2 %v97_v0  ;;  %121 = vmatpush.msra.mxu0 %v97_v0  ;;  %v95_v2 = vld [vmem:[#allocation7 + $0x8] sm:$0xff]  ;;  %v137_v3 = vld [vmem:[#allocation8 + $0x18] sm:$0xff]  ;;  %v94_v4 = vld [vmem:[#allocation7] sm:$0xff]  ;;  %s194_s22 = sshll.u32 %s398_s21, 4  ;;  %s196_s24 = sshll.u32 %s497_s7, 4  ;;  %s195_s22 = int_to_ptr.vmem [resolvable:$true] %s194_s22  ;;  %s197_s24 = int_to_ptr.hbm [resolvable:$true] %s196_s24 }
  0x16   :  { %224 = vmatpush.msra.mxu3 %v137_v3  ;;  %160 = vmatpush.msra.mxu1 %v137_v3  ;;  %v91_v5 = vld [vmem:[#allocation2 + $0x8] sm:$0xff]  ;;  %v90_v6 = vld [vmem:[#allocation2] sm:$0xff]  ;;  %v136_v7 = vld [vmem:[#allocation8 + $0x10] sm:$0xff]  ;;  %s399_s27 = smov [#allocation10]   ;;  %s183_s30 = sshll.u32 %s496_s6, 4  ;;  %s184_s30 = int_to_ptr.hbm [resolvable:$true] %s183_s30 }
  0x17   :  { %221 = vmatpush.msra.mxu2 %v96_v1  ;;  %122 = vmatpush.msra.mxu0 %v96_v1  ;;  %v135_v8 = vld [vmem:[#allocation8 + $0x8] sm:$0xff]  ;;  %v134_v9 = vld [vmem:[#allocation8] sm:$0xff]  ;;  %v92_v11 = vld [vmem:[#allocation5] sm:$0xff]  ;;  %s181_s28 = sshll.u32 %s399_s27, 4  ;;  %s182_s28 = int_to_ptr.vmem [resolvable:$true] %s181_s28 }
  0x18   :  { %225 = vmatpush.msra.mxu3 %v136_v7  ;;  %161 = vmatpush.msra.mxu1 %v136_v7  ;;  %v236_v10 = vld [vmem:[%s493_s3] ss:$0 sm:$0xff]  ;;  %v93_v15 = vld [vmem:[#allocation5 + $0x8] sm:$0xff] }
  0x19   :  { %222 = vmatpush.msra.mxu2 %v95_v2  ;;  %123 = vmatpush.msra.mxu0 %v95_v2  ;;  %v237_v19 = vld [vmem:[%s495_s5] ss:$0 sm:$0xff] }
  0x1a   :  { %226 = vmatpush.msra.mxu3 %v135_v8  ;;  %162 = vmatpush.msra.mxu1 %v135_v8 }
  0x1b   :  { %223 = vmatpush.msra.mxu2 %v94_v4  ;;  %124 = vmatpush.msra.mxu0 %v94_v4 }
  0x1c   :  { %217 = vmatmul.msk.f32.vlgmr.msra.gmra.mxu2 %vm102_vm0, %v91_v5  ;;  %216 = vmatmul.msk.f32.vlgmr.msra.gmra.mxu0 %vm102_vm0, %v90_v6 }
  0x1d   :  { %227 = vmatpush.msra.mxu3 %v134_v9  ;;  %163 = vmatpush.msra.mxu1 %v134_v9 }
  0x99   :  { %v126_v12 = vpop.f32.mrf.mxu0 }
  0x9a   :  { %v127_v13 = vadd.f32 %v236_v10, %v126_v12 }
  0x9c   :  { %v132_v14 = vsub.f32 %v92_v11, %v127_v13 }
  0x9e   :  { %173 = vst.msk [vmem:[#allocation11] sm:$0xff] %vm102_vm0, %v132_v14  ;;  %218 = vmatmul.msk.f32.vlgmr.msra.gmra.mxu1 %vm102_vm0, %v132_v14 }
  0x9f   :  { %v129_v16 = vpop.f32.mrf.mxu2 }
  0xa0   :  { %v130_v17 = vadd.f32 %v236_v10, %v129_v16 }
  0xa2   :  { %v133_v18 = vsub.f32 %v93_v15, %v130_v17 }
  0xa4   :  { %174 = vst.msk [vmem:[#allocation11 + $0x8] sm:$0xff] %vm102_vm0, %v133_v18  ;;  %219 = vmatmul.msk.f32.vlgmr.msra.gmra.mxu3 %vm102_vm0, %v133_v18 }
  0xa5   :  { %202 = dma.vmem_to_hbm [thread:$0]  %s195_s22, 256, %s197_s24, [#allocation12], %s393_s9, %s393_s9, %s394_s10  }
 0x11b   :  { %v165_v20 = vpop.f32.mrf.mxu1 }
 0x11c   :  { %v166_v21 = vadd.f32 %v237_v19, %v165_v20 }
 0x11e   :  { %v171_v22 = vadd.f32 %v166_v21, %v90_v6 }
 0x120   :  { %175 = vst.msk [vmem:[#allocation10] sm:$0xff] %vm102_vm0, %v171_v22 }
 0x127   :  { %v168_v23 = vpop.f32.mrf.mxu3 }
 0x128   :  { %v169_v24 = vadd.f32 %v237_v19, %v168_v23 }
 0x12a   :  { %v172_v25 = vadd.f32 %v169_v24, %v91_v5 }
 0x12c   :  { %176 = vst.msk [vmem:[#allocation10 + $0x8] sm:$0xff] %vm102_vm0, %v172_v25 }
 0x12d   :  { %189 = dma.vmem_to_hbm [thread:$0]  %s182_s28, 256, %s184_s30, [#allocation4], %s393_s9, %s393_s9, %s394_s10  }
 0x12e   :  { %388 = dma.done.wait [#allocation4], 256  }
 0x12f   :  { %389 = vsyncadd [#allocation4], 4294967040 }
 0x130   :  { %390 = dma.done.wait [#allocation12], 256  }
 0x131   :  { %391 = vsyncadd [#allocation12], 4294967040 }
 0x132   :  { %211 = vsyncpa [#allocation3], 1 }
 0x133   :  { %212 = vsyncpa [#allocation6], 1 }
 0x134   :  { %213 = vsyncpa [#allocation9], 1 }
 0x135   :  { %214 = vsyncpa [#allocation4], 1 }
 0x136   :  { %215 = vsyncpa [#allocation12], 1 }

// kernel: tpu_custom_call.1
= control target key start
LH: loop header
LB: loop body
LE: loop exit
PB: predicated region body
PF: predicated region fallthrough
CT: control target
= control target key end

     0   :  { %13 = vsyncpa [#allocation3], 0  ;;  %s490_s0 = inlined_call_operand.hbm [shape: f32[16,32], index: 0, kind: input, shape index: {}]   ;;  %s491_s1 = inlined_call_operand.hbm [shape: f32[16,32], index: 1, kind: input, shape index: {}]   ;;  %s492_s2 = inlined_call_operand.hbm [shape: f32[32,32], index: 2, kind: input, shape index: {}]   ;;  %s493_s3 = inlined_call_operand.vmem [shape: f32[1,32], index: 3, kind: input, shape index: {}]   ;;  %s494_s4 = inlined_call_operand.hbm [shape: f32[32,32], index: 4, kind: input, shape index: {}]   ;;  %s495_s5 = inlined_call_operand.vmem [shape: f32[1,32], index: 5, kind: input, shape index: {}]   ;;  %s496_s6 = inlined_call_operand.hbm [shape: f32[16,32], index: 6, kind: output, shape index: {0}]   ;;  %s497_s7 = inlined_call_operand.hbm [shape: f32[16,32], index: 7, kind: output, shape index: {1}]  }
   0x1   :  { %14 = vsyncpa [#allocation6], 0 }
   0x2   :  { %15 = vsyncpa [#allocation9], 0 }
   0x3   :  { %16 = vsyncpa [#allocation4], 0 }
   0x4   :  { %17 = vsyncpa [#allocation12], 0  ;;  %s35_s26 = sshll.u32 %s491_s1, 4  ;;  %s392_s27 = smov [#allocation5]   ;;  %s36_s26 = int_to_ptr.hbm [resolvable:$true] %s35_s26 }
   0x5   :  { %s37_s28 = sshll.u32 %s392_s27, 4  ;;  %s22_s8 = sshll.u32 %s490_s0, 4  ;;  %s38_s28 = int_to_ptr.vmem [resolvable:$true] %s37_s28  ;;  %s23_s8 = int_to_ptr.hbm [resolvable:$true] %s22_s8 }
   0x6   :  { %s393_s9 = smov 128   ;;  %s394_s10 = smov 8  }
   0x7   :  { %43 = dma.hbm_to_vmem [thread:$0]  %s36_s26, 256, %s38_s28, [#allocation6], %s393_s9, %s393_s9, %s394_s10  }
   0x8   :  { %s395_s11 = smov [#allocation2]   ;;  %s48_s1 = sshll.u32 %s492_s2, 4  ;;  %s49_s1 = int_to_ptr.hbm [resolvable:$true] %s48_s1 }
   0x9   :  { %s24_s12 = sshll.u32 %s395_s11, 4  ;;  %s63_s16 = sshll.u32 %s494_s4, 4  ;;  %s25_s12 = int_to_ptr.vmem [resolvable:$true] %s24_s12  ;;  %s64_s16 = int_to_ptr.hbm [resolvable:$true] %s63_s16 }
   0xa   :  { %30 = dma.hbm_to_vmem [thread:$0]  %s23_s8, 256, %s25_s12, [#allocation3], %s393_s9, %s393_s9, %s394_s10  }
   0xb   :  { %s396_s17 = smov [#allocation7]   ;;  %s397_s19 = smov [#allocation8]  }
   0xc   :  { %s50_s18 = sshll.u32 %s396_s17, 4  ;;  %s65_s2 = sshll.u32 %s397_s19, 4  ;;  %s51_s18 = int_to_ptr.vmem [resolvable:$true] %s50_s18  ;;  %s66_s2 = int_to_ptr.vmem [resolvable:$true] %s65_s2 }
   0xd   :  { %56 = dma.hbm_to_vmem [thread:$0]  %s49_s1, 512, %s51_s18, [#allocation6], %s393_s9, %s393_s9, %s394_s10  }
   0xe   :  { %71 = dma.hbm_to_vmem [thread:$0]  %s64_s16, 512, %s66_s2, [#allocation9], %s393_s9, %s393_s9, %s394_s10  }
   0xf   :  { %382 = dma.done.wait [#allocation3], 256  }
  0x10   :  { %383 = vsyncadd [#allocation3], 4294967040 }
  0x11   :  { %384 = dma.done.wait [#allocation6], 768  }
  0x12   :  { %385 = vsyncadd [#allocation6], 4294966528 }
  0x13   :  { %386 = dma.done.wait [#allocation9], 512  }
  0x14   :  { %387 = vsyncadd [#allocation9], 4294966784  ;;  %v97_v0 = vld [vmem:[#allocation7 + $0x18] sm:$0xff]  ;;  %v96_v1 = vld [vmem:[#allocation7 + $0x10] sm:$0xff]  ;;  %vm102_vm0 = vcmask 261120   ;;  %s398_s21 = smov [#allocation11]  }
  0x15   :  { %220 = vmatpush.msra.mxu2 %v97_v0  ;;  %121 = vmatpush.msra.mxu0 %v97_v0  ;;  %v95_v2 = vld [vmem:[#allocation7 + $0x8] sm:$0xff]  ;;  %v137_v3 = vld [vmem:[#allocation8 + $0x18] sm:$0xff]  ;;  %v94_v4 = vld [vmem:[#allocation7] sm:$0xff]  ;;  %s194_s22 = sshll.u32 %s398_s21, 4  ;;  %s196_s24 = sshll.u32 %s497_s7, 4  ;;  %s195_s22 = int_to_ptr.vmem [resolvable:$true] %s194_s22  ;;  %s197_s24 = int_to_ptr.hbm [resolvable:$true] %s196_s24 }
  0x16   :  { %224 = vmatpush.msra.mxu3 %v137_v3  ;;  %160 = vmatpush.msra.mxu1 %v137_v3  ;;  %v91_v5 = vld [vmem:[#allocation2 + $0x8] sm:$0xff]  ;;  %v90_v6 = vld [vmem:[#allocation2] sm:$0xff]  ;;  %v136_v7 = vld [vmem:[#allocation8 + $0x10] sm:$0xff]  ;;  %s399_s27 = smov [#allocation10]   ;;  %s183_s30 = sshll.u32 %s496_s6, 4  ;;  %s184_s30 = int_to_ptr.hbm [resolvable:$true] %s183_s30 }
  0x17   :  { %221 = vmatpush.msra.mxu2 %v96_v1  ;;  %122 = vmatpush.msra.mxu0 %v96_v1  ;;  %v135_v8 = vld [vmem:[#allocation8 + $0x8] sm:$0xff]  ;;  %v134_v9 = vld [vmem:[#allocation8] sm:$0xff]  ;;  %v92_v11 = vld [vmem:[#allocation5] sm:$0xff]  ;;  %s181_s28 = sshll.u32 %s399_s27, 4  ;;  %s182_s28 = int_to_ptr.vmem [resolvable:$true] %s181_s28 }
  0x18   :  { %225 = vmatpush.msra.mxu3 %v136_v7  ;;  %161 = vmatpush.msra.mxu1 %v136_v7  ;;  %v236_v10 = vld [vmem:[%s493_s3] ss:$0 sm:$0xff]  ;;  %v93_v15 = vld [vmem:[#allocation5 + $0x8] sm:$0xff] }
  0x19   :  { %222 = vmatpush.msra.mxu2 %v95_v2  ;;  %123 = vmatpush.msra.mxu0 %v95_v2  ;;  %v237_v19 = vld [vmem:[%s495_s5] ss:$0 sm:$0xff] }
  0x1a   :  { %226 = vmatpush.msra.mxu3 %v135_v8  ;;  %162 = vmatpush.msra.mxu1 %v135_v8 }
  0x1b   :  { %223 = vmatpush.msra.mxu2 %v94_v4  ;;  %124 = vmatpush.msra.mxu0 %v94_v4 }
  0x1c   :  { %217 = vmatmul.msk.f32.vlgmr.msra.gmra.mxu2 %vm102_vm0, %v91_v5  ;;  %216 = vmatmul.msk.f32.vlgmr.msra.gmra.mxu0 %vm102_vm0, %v90_v6 }
  0x1d   :  { %227 = vmatpush.msra.mxu3 %v134_v9  ;;  %163 = vmatpush.msra.mxu1 %v134_v9 }
  0x99   :  { %v126_v12 = vpop.f32.mrf.mxu0 }
  0x9a   :  { %v127_v13 = vadd.f32 %v236_v10, %v126_v12 }
  0x9c   :  { %v132_v14 = vsub.f32 %v92_v11, %v127_v13 }
  0x9e   :  { %173 = vst.msk [vmem:[#allocation11] sm:$0xff] %vm102_vm0, %v132_v14  ;;  %218 = vmatmul.msk.f32.vlgmr.msra.gmra.mxu1 %vm102_vm0, %v132_v14 }
  0x9f   :  { %v129_v16 = vpop.f32.mrf.mxu2 }
  0xa0   :  { %v130_v17 = vadd.f32 %v236_v10, %v129_v16 }
  0xa2   :  { %v133_v18 = vsub.f32 %v93_v15, %v130_v17 }
  0xa4   :  { %174 = vst.msk [vmem:[#allocation11 + $0x8] sm:$0xff] %vm102_vm0, %v133_v18  ;;  %219 = vmatmul.msk.f32.vlgmr.msra.gmra.mxu3 %vm102_vm0, %v133_v18 }
  0xa5   :  { %202 = dma.vmem_to_hbm [thread:$0]  %s195_s22, 256, %s197_s24, [#allocation12], %s393_s9, %s393_s9, %s394_s10  }
 0x11b   :  { %v165_v20 = vpop.f32.mrf.mxu1 }
 0x11c   :  { %v166_v21 = vadd.f32 %v237_v19, %v165_v20 }
 0x11e   :  { %v171_v22 = vadd.f32 %v166_v21, %v90_v6 }
 0x120   :  { %175 = vst.msk [vmem:[#allocation10] sm:$0xff] %vm102_vm0, %v171_v22 }
 0x127   :  { %v168_v23 = vpop.f32.mrf.mxu3 }
 0x128   :  { %v169_v24 = vadd.f32 %v237_v19, %v168_v23 }
 0x12a   :  { %v172_v25 = vadd.f32 %v169_v24, %v91_v5 }
 0x12c   :  { %176 = vst.msk [vmem:[#allocation10 + $0x8] sm:$0xff] %vm102_vm0, %v172_v25 }
 0x12d   :  { %189 = dma.vmem_to_hbm [thread:$0]  %s182_s28, 256, %s184_s30, [#allocation4], %s393_s9, %s393_s9, %s394_s10  }
 0x12e   :  { %388 = dma.done.wait [#allocation4], 256  }
 0x12f   :  { %389 = vsyncadd [#allocation4], 4294967040 }
 0x130   :  { %390 = dma.done.wait [#allocation12], 256  }
 0x131   :  { %391 = vsyncadd [#allocation12], 4294967040 }
 0x132   :  { %211 = vsyncpa [#allocation3], 1 }
 0x133   :  { %212 = vsyncpa [#allocation6], 1 }
 0x134   :  { %213 = vsyncpa [#allocation9], 1 }
 0x135   :  { %214 = vsyncpa [#allocation4], 1 }
 0x136   :  { %215 = vsyncpa [#allocation12], 1 }

</bundles_post_ra>
